<compile_context>
chip_gen: v7x
topology: tpu7x:2x2x1
jax: 0.10.0
libtpu: 0.0.40
codegen_flags: <defaults>
</compile_context>

<pallas_src>
import functools
import math

import jax
import jax.numpy as jnp
from jax.experimental import pallas as pl
from jax.experimental.pallas import tpu as pltpu


def _swish_kernel(x_ref, o_ref):
    x = x_ref[...]
    # Compute in f32 for accuracy (required on v5e: no bf16 VPU/EUP), then
    # cast back to the output dtype.
    xf = x.astype(jnp.float32)
    y = xf * jax.nn.sigmoid(xf)
    o_ref[...] = y.astype(o_ref.dtype)


def _round_up(a: int, b: int) -> int:
    return ((a + b - 1) // b) * b


def _sublane(dtype) -> int:
    # Native packed tile: (8,128) f32, (16,128) bf16/f16, (32,128) int8/fp8.
    itemsize = jnp.dtype(dtype).itemsize
    return max(8, 32 // max(1, itemsize))


@functools.lru_cache(maxsize=1)
def _tpu_setup():
    """Best-effort generation detection -> (block_bytes, vmem_limit, num_tc)."""
    kind = ""
    try:
        kind = jax.devices()[0].device_kind.lower()
    except Exception:
        pass

    vmem_capacity = None
    try:
        vmem_capacity = int(pltpu.get_tpu_info().vmem_capacity_bytes)
    except Exception:
        vmem_capacity = None

    is_v7 = ("v7" in kind) or ("7x" in kind)
    is_v5e = ("v5e" in kind) or ("v5 lite" in kind) or ("v5lite" in kind)
    is_v6 = "v6" in kind

    if vmem_capacity is None:
        # v7x has 64 MiB per TC; v5e/v6e have 128 MiB.
        vmem_capacity = (64 << 20) if is_v7 else (128 << 20)

    # ~0.7x of physical VMEM, capped, so double-buffered I/O + compiler
    # internal scratch never hits the physical ceiling.
    vmem_limit = min(int(0.7 * vmem_capacity), 96 << 20)

    if is_v7:
        block_bytes = 6 << 20   # ~3.2 TB/s HBM: amortize per-step overhead to <7%
        num_tc = 2              # megacore: 2 TensorCores per chip
    elif is_v5e:
        block_bytes = 2 << 20   # ~820 GB/s HBM: 2 MiB already ~6% overhead
        num_tc = 1
    elif is_v6:
        block_bytes = 4 << 20   # ~1.4 TB/s HBM: ~3-6% overhead at 4 MiB
        num_tc = 1
    else:
        block_bytes = 4 << 20   # unknown generation: safe middle ground
        num_tc = 1

    # Safety clamp: in+out double buffers (4x block) plus headroom must fit.
    block_bytes = min(block_bytes, max(1 << 20, vmem_limit // 6))
    return block_bytes, vmem_limit, num_tc


def swish(x, *, lane_cols: int = 512):
    """Elementwise swish. Accepts any shape; flattens to a lane-dense 2D slab."""
    orig_shape = x.shape
    dtype = x.dtype
    itemsize = jnp.dtype(dtype).itemsize

    total = int(math.prod(orig_shape)) if len(orig_shape) > 0 else 1

    block_bytes, vmem_limit, num_tc = _tpu_setup()

    cols = lane_cols                      # multiple of 128 -> unmasked vst
    sub = _sublane(dtype)                 # dtype-aware sublane rounding

    # Slab rows: only round up to the native tile (sublane), NOT to block_rows.
    rows = _round_up(pl.cdiv(total, cols), sub)
    padded_total = rows * cols

    # Block rows sized by bytes (generation-aware), multiple of sublane,
    # clamped to the slab so the block never exceeds the array.
    block_rows = max(sub, ((block_bytes // (cols * itemsize)) // sub) * sub)
    block_rows = min(block_rows, rows)
    grid_n = pl.cdiv(rows, block_rows)    # ragged last block is fine: Pallas
                                          # masks out-of-bounds stores.

    # On 2-TC parts (v7x) make sure each core gets >=2 blocks so the
    # auto-pipeline has something to prefetch; skip on single-TC parts where
    # a forced split is pure per-step overhead.
    if num_tc > 1:
        min_steps = 2 * num_tc
        if grid_n < min_steps and rows >= min_steps * sub:
            block_rows = min(rows, max(sub, _round_up(pl.cdiv(rows, min_steps), sub)))
            grid_n = pl.cdiv(rows, block_rows)

    x_flat = x.reshape(-1)
    needs_pad = padded_total != total
    if needs_pad:
        # Only the flat tail (< sublane*cols elements) is padded; shapes whose
        # size already divides (sublane*cols) take the copy-free fast path.
        x_flat = jnp.pad(x_flat, (0, padded_total - total))
    x2 = x_flat.reshape(rows, cols)

    out = pl.pallas_call(
        _swish_kernel,
        out_shape=jax.ShapeDtypeStruct((rows, cols), dtype),
        grid=(grid_n,),
        in_specs=[pl.BlockSpec((block_rows, cols), lambda i: (i, 0))],
        out_specs=pl.BlockSpec((block_rows, cols), lambda i: (i, 0)),
        compiler_params=pltpu.CompilerParams(
            dimension_semantics=("parallel",),
            vmem_limit_bytes=vmem_limit,
        ),
    )(x2)

    if needs_pad:
        return out.reshape(-1)[:total].reshape(orig_shape)
    return out.reshape(orig_shape)


if __name__ == "__main__":
    key = jax.random.PRNGKey(0)
    # NCHW input, consistent with PyTorch conventions: batch=2, C=4, H=W=16
    x = jax.random.normal(key, (2, 4, 16, 16), dtype=jnp.float32)

    y = swish(x)
    jax.block_until_ready(y)

    # Reference check against plain JAX swish.
    y_ref = x * jax.nn.sigmoid(x)
    assert y.shape == x.shape and y.dtype == x.dtype
    assert jnp.allclose(y, y_ref, atol=1e-6, rtol=1e-6)

    # Also exercise a larger, non-divisible shape to hit the ragged-block path.
    x2 = jax.random.normal(key, (3, 7, 33, 65), dtype=jnp.float32)
    y2 = swish(x2)
    jax.block_until_ready(y2)
    assert jnp.allclose(y2, x2 * jax.nn.sigmoid(x2), atol=1e-6, rtol=1e-6)

    print("KERNEL_OK")
</pallas_src>

<mosaic_0001>
module attributes {stable_mosaic.version = 11 : i64} {
  func.func @_swish_kernel(%arg0: i32, %arg1: memref<8x512xf32, #tpu.memory_space<vmem>>, %arg2: memref<8x512xf32, #tpu.memory_space<vmem>>) attributes {dimension_semantics = [#tpu.dimension_semantics<parallel>], iteration_bounds = array<i64: 1>, scalar_prefetch = 0 : i64, scratch_operands = 0 : i64, tpu.core_type = #tpu.core_type<tc>, window_params = [{transform_indices = @transform_0, window_bounds = array<i64: 8, 512>}, {transform_indices = @transform_1, window_bounds = array<i64: 8, 512>}]} {
    %c0 = arith.constant 0 : index
    %c0_0 = arith.constant 0 : index
    %0 = vector.load %arg1[%c0, %c0_0] : memref<8x512xf32, #tpu.memory_space<vmem>>, vector<8x512xf32>
    %1 = arith.negf %0 : vector<8x512xf32>
    %2 = math.exp %1 : vector<8x512xf32>
    %cst = arith.constant 1.000000e+00 : f32
    %3 = vector.broadcast %cst : f32 to vector<8x512xf32>
    %4 = arith.addf %3, %2 : vector<8x512xf32>
    %5 = arith.divf %3, %4 : vector<8x512xf32>
    %6 = arith.mulf %0, %5 : vector<8x512xf32>
    %c0_1 = arith.constant 0 : index
    %c0_2 = arith.constant 0 : index
    %7 = vector.load %arg2[%c0_1, %c0_2] : memref<8x512xf32, #tpu.memory_space<vmem>>, vector<8x512xf32>
    tpu.vector_store %arg2[%c0_1, %c0_2], %6 {strides = array<i32>} : memref<8x512xf32, #tpu.memory_space<vmem>>, vector<8x512xf32>,
    return
  }
  func.func @transform_0(%arg0: i32) -> (i32, i32) {
    %c0_i32 = arith.constant 0 : i32
    %c0_i32_0 = arith.constant 0 : i32
    return %arg0, %c0_i32 : i32, i32
  }
  func.func @transform_1(%arg0: i32) -> (i32, i32) {
    %c0_i32 = arith.constant 0 : i32
    %c0_i32_0 = arith.constant 0 : i32
    return %arg0, %c0_i32 : i32, i32
  }
}

</mosaic_0001>

<bundles_post_ra>
// kernel: tpu_custom_call.1
= control target key start
LH: loop header
LB: loop body
LE: loop exit
PB: predicated region body
PF: predicated region fallthrough
CT: control target
= control target key end

     0   :  { %6 = vsyncpa [#allocation3], 0  ;;  %s178_s0 = inlined_call_operand.hbm [shape: f32[8,512], index: 0, kind: input, shape index: {}]   ;;  %s179_s1 = inlined_call_operand.hbm [shape: f32[8,512], index: 1, kind: output, shape index: {}]  }
   0x1   :  { %7 = vsyncpa [#allocation4], 0  ;;  %s142_s6 = smov [#allocation2]   ;;  %s94_s10 = scalar_lea.hbm %s178_s0, 512 }
   0x2   :  { %s14_s7 = sshll.u32 %s142_s6, 4  ;;  %p95_p0 = scmp.ne.s32.totalorder %s178_s0, %s94_s10  ;;  %s15_s7 = int_to_ptr.vmem [resolvable:$true] %s14_s7 }
   0x3   :  { %p98_p1 = scmp.lt.u32.totalorder %s94_s10, %s178_s0 }
   0x5   :  { %p100_p2 = pnand %p98_p1, %p95_p0 }
   0x7   :  { %103 = shalt.err (!%p100_p2)
}
   0x8   :  { %s104_s15 = scalar_lea.vmem %s15_s7, 512  ;;  %p109_p4 = scmp.lt.s32.totalorder %s15_s7, %s15_s7 }
   0x9   :  { %p105_p3 = scmp.ne.s32.totalorder %s15_s7, %s104_s15  ;;  %p110_p5 = scmp.lt.s32.totalorder %s104_s15, %s104_s15 }
   0xb   :  { %p111_p6 = por %p110_p5, %p109_p4 }
   0xd   :  { %p112_p7 = pnand %p111_p6, %p105_p3 }
   0xf   :  { %115 = shalt.err (!%p112_p7)
}
  0x10   :  { %17 = dma.hbm_to_vmem [thread:$0]  %s178_s0, 512, %s15_s7, [#allocation3]  }
  0x11   :  { %138 = dma.done.wait [#allocation3], 512  }
  0x12   :  { %139 = vsyncadd [#allocation3], 4294966784  ;;  %v21_v0 = vld [vmem:[#allocation2] sm:$0xff]  ;;  %v22_v1 = vld [vmem:[#allocation2 + $0x8] sm:$0xff]  ;;  %s143_s0 = smov [#allocation5]  }
  0x13   :  { %v23_v2 = vld [vmem:[#allocation2 + $0x10] sm:$0xff]  ;;  %v72_v3 = vmul.f32 -1.442695, %v21_v0  ;;  %v73_v4 = vmul.f32 -1.442695, %v22_v1  ;;  %v24_v6 = vld [vmem:[#allocation2 + $0x18] sm:$0xff] }
  0x14   :  { %v74_v5 = vmul.f32 -1.442695, %v23_v2  ;;  %v75_v7 = vmul.f32 -1.442695, %v24_v6  ;;  %s63_s18 = sshll.u32 %s143_s0, 4  ;;  %s64_s18 = int_to_ptr.vmem [resolvable:$true] %s63_s18 }
  0x15   :  { %78 = vpow2.f32 %v72_v3  ;;  %s116_s19 = scalar_lea.vmem %s64_s18, 512  ;;  %p121_p9 = scmp.lt.s32.totalorder %s64_s18, %s64_s18 }
  0x16   :  { %80 = vpow2.f32 %v73_v4  ;;  %p117_p8 = scmp.ne.s32.totalorder %s64_s18, %s116_s19  ;;  %p122_p10 = scmp.lt.s32.totalorder %s116_s19, %s116_s19 }
  0x17   :  { %82 = vpow2.f32 %v74_v5 }
  0x18   :  { %84 = vpow2.f32 %v75_v7  ;;  %p123_p11 = por %p122_p10, %p121_p9 }
  0x1a   :  { %p124_p12 = pnand %p123_p11, %p117_p8 }
  0x1f   :  { %v79_v8 = vpop.eup %78 }
  0x20   :  { %v81_v9 = vpop.eup %80  ;;  %v37_v10 = vadd.f32 1.0, %v79_v8 }
  0x21   :  { %v83_v11 = vpop.eup %82  ;;  %v38_v12 = vadd.f32 1.0, %v81_v9 }
  0x22   :  { %v85_v13 = vpop.eup %84  ;;  %86 = vrcp.f32 %v37_v10  ;;  %v39_v14 = vadd.f32 1.0, %v83_v11 }
  0x23   :  { %88 = vrcp.f32 %v38_v12  ;;  %v40_v15 = vadd.f32 1.0, %v85_v13 }
  0x24   :  { %90 = vrcp.f32 %v39_v14 }
  0x25   :  { %92 = vrcp.f32 %v40_v15 }
  0x2c   :  { %v87_v16 = vpop.eup %86 }
  0x2d   :  { %v89_v17 = vpop.eup %88  ;;  %v49_v18 = vmul.f32 %v87_v16, %v21_v0 }
  0x2e   :  { %v91_v19 = vpop.eup %90  ;;  %v50_v20 = vmul.f32 %v89_v17, %v22_v1 }
  0x2f   :  { %v93_v21 = vpop.eup %92  ;;  %53 = vst [vmem:[#allocation5] sm:$0xff] %v49_v18  ;;  %v51_v22 = vmul.f32 %v91_v19, %v23_v2 }
  0x30   :  { %54 = vst [vmem:[#allocation5 + $0x8] sm:$0xff] %v50_v20  ;;  %v52_v23 = vmul.f32 %v93_v21, %v24_v6 }
  0x31   :  { %55 = vst [vmem:[#allocation5 + $0x10] sm:$0xff] %v51_v22 }
  0x32   :  { %56 = vst [vmem:[#allocation5 + $0x18] sm:$0xff] %v52_v23 }
  0x33   :  { %127 = shalt.err (!%p124_p12)
}
  0x34   :  { %s128_s22 = scalar_lea.hbm %s179_s1, 512 }
  0x35   :  { %p129_p13 = scmp.ne.s32.totalorder %s179_s1, %s128_s22  ;;  %p132_p0 = scmp.lt.u32.totalorder %s128_s22, %s179_s1 }
  0x37   :  { %p134_p1 = pnand %p132_p0, %p129_p13 }
  0x39   :  { %137 = shalt.err (!%p134_p1)
}
  0x3a   :  { %66 = dma.vmem_to_hbm [thread:$0]  %s64_s18, 512, %s179_s1, [#allocation4]  }
  0x3b   :  { %140 = dma.done.wait [#allocation4], 512  }
  0x3c   :  { %141 = vsyncadd [#allocation4], 4294966784 }
  0x3d   :  { %70 = vsyncpa [#allocation3], 1 }
  0x3e   :  { %71 = vsyncpa [#allocation4], 1 }

</bundles_post_ra>
